<compile_context>
chip_gen: v7x
topology: tpu7x:2x2x1
jax: 0.10.0
libtpu: 0.0.40
codegen_flags: <defaults>
</compile_context>

<pallas_src>
import functools

import jax
import jax.numpy as jnp
from jax.experimental import pallas as pl
from jax.experimental.pallas import tpu as pltpu

N_GATES = 5
LANE = 128
SUBLANE = 8


def _round_up(x, m):
    return (x + m - 1) // m * m


def _ep_lstm_kernel(xh_ref, c_ref, m_ref, w_ref, b_ref, ht_ref, ct_ref):
    Dhp = ht_ref.shape[1]

    # One fused MXU matmul: (bm, Dx+Dh) @ (Dx+Dh, 5*Dhp), bf16 in / f32 accumulate.
    gates = jnp.dot(xh_ref[...], w_ref[...],
                    preferred_element_type=jnp.float32) + b_ref[...]

    # I/F/O/R columns were pre-scaled by 0.5, so a single tanh over the whole
    # gate tensor gives every nonlinearity:
    #   sigmoid(x) = 0.5 * tanh(x / 2) + 0.5 ,   gt = tanh(x).
    t = jnp.tanh(gates)

    # Gate order I, F, G, O, R; Dhp is a multiple of 128 so slices are lane-aligned.
    it = 0.5 * t[:, 0 * Dhp:1 * Dhp] + 0.5
    ft = 0.5 * t[:, 1 * Dhp:2 * Dhp] + 0.5
    gt =       t[:, 2 * Dhp:3 * Dhp]
    ot = 0.5 * t[:, 3 * Dhp:4 * Dhp] + 0.5
    rt = 0.5 * t[:, 4 * Dhp:5 * Dhp] + 0.5

    ct = ft * c_ref[...] + it * gt + rt * jnp.tanh(m_ref[...])
    ht = ot * jnp.tanh(ct)

    ht_ref[...] = ht.astype(ht_ref.dtype)
    ct_ref[...] = ct.astype(ct_ref.dtype)


def prepare_params(wx, bx, wh, bh):
    """One-time parameter prep: fuse [Wx;Wh], sum biases, fold sigmoid half-scale,
    pad each gate slot to a 128-lane multiple, cast weights to bf16.

    Returns (w_bf16 (Dx+Dh, 5*Dhp), b_f32 (1, 5*Dhp)).
    """
    Dx = wx.shape[0]
    Dh = wh.shape[0]
    Dhp = _round_up(Dh, LANE)

    w = jnp.concatenate([wx, wh], axis=0).astype(jnp.float32)   # (Dx+Dh, 5*Dh)
    b = (bx + bh).astype(jnp.float32)                           # (1, 5*Dh)

    # Fold the 0.5 of sigmoid-via-tanh into I, F, O, R columns (G stays plain tanh).
    gate_scale = jnp.array([0.5, 0.5, 1.0, 0.5, 0.5], jnp.float32)
    w = w.reshape(Dx + Dh, N_GATES, Dh) * gate_scale[None, :, None]
    b = b.reshape(1, N_GATES, Dh) * gate_scale[None, :, None]

    # Pad each gate's hidden slot to Dhp so gate slices are lane-tile aligned.
    pad = Dhp - Dh
    w = jnp.pad(w, ((0, 0), (0, 0), (0, pad))).reshape(Dx + Dh, N_GATES * Dhp)
    b = jnp.pad(b, ((0, 0), (0, 0), (0, pad))).reshape(1, N_GATES * Dhp)

    return w.astype(jnp.bfloat16), b


@functools.partial(jax.jit, static_argnames=("block_b",))
def ep_lstm_cell(xt, mt, h_tm1, c_tm1, w, b, block_b=256):
    """Single EpLSTMCell step. Returns (ht, (ht, ct)) like the torch module."""
    B, Dx = xt.shape
    Dh = h_tm1.shape[1]
    Din = Dx + Dh
    G = w.shape[1]
    Dhp = G // N_GATES

    # Fused activation input for the single matmul; bf16 feeds the MXU fast path.
    xh = jnp.concatenate([xt, h_tm1], axis=1).astype(jnp.bfloat16)   # (B, Din)

    # Pad hidden-sized state inputs up to the lane-aligned Dhp (zeros are benign;
    # padded lanes are sliced off at the end).
    pad_h = Dhp - Dh
    c_p = jnp.pad(c_tm1.astype(jnp.float32), ((0, 0), (0, pad_h)))
    m_p = jnp.pad(mt.astype(jnp.float32), ((0, 0), (0, pad_h)))

    # Batch tiling: bm rows per grid step (sublane-aligned); pad B up to a multiple.
    bm = min(block_b, _round_up(B, SUBLANE))
    Bp = _round_up(B, bm)
    pad_b = Bp - B
    if pad_b:
        xh = jnp.pad(xh, ((0, pad_b), (0, 0)))
        c_p = jnp.pad(c_p, ((0, pad_b), (0, 0)))
        m_p = jnp.pad(m_p, ((0, pad_b), (0, 0)))
    nb = Bp // bm

    ht_p, ct_p = pl.pallas_call(
        _ep_lstm_kernel,
        out_shape=(
            jax.ShapeDtypeStruct((Bp, Dhp), jnp.float32),
            jax.ShapeDtypeStruct((Bp, Dhp), jnp.float32),
        ),
        grid=(nb,),
        in_specs=[
            pl.BlockSpec((bm, Din), lambda i: (i, 0)),   # fused [x, h] tile
            pl.BlockSpec((bm, Dhp), lambda i: (i, 0)),   # c_{t-1} tile
            pl.BlockSpec((bm, Dhp), lambda i: (i, 0)),   # m_t tile
            pl.BlockSpec((Din, G), lambda i: (0, 0)),    # fused weights (VMEM-resident)
            pl.BlockSpec((1, G), lambda i: (0, 0)),      # fused bias   (VMEM-resident)
        ],
        out_specs=(
            pl.BlockSpec((bm, Dhp), lambda i: (i, 0)),
            pl.BlockSpec((bm, Dhp), lambda i: (i, 0)),
        ),
        compiler_params=pltpu.CompilerParams(
            dimension_semantics=("parallel",)),
    )(xh, c_p, m_p, w, b)

    ht = ht_p[:B, :Dh].astype(xt.dtype)
    ct = ct_p[:B, :Dh].astype(xt.dtype)
    return ht, (ht, ct)


def init_params(key, Dx, Dh, dtype=jnp.float32):
    """Deterministic init mirroring reset_parameters_():
       - input kernel: xavier-uniform per gate, zero bias
       - recurrent kernel: orthogonal per gate, zero bias except forget bias = 1
    """
    keys = jax.random.split(key, 2 * N_GATES)

    limit = jnp.sqrt(6.0 / (Dx + Dh))
    wx_gates = [
        jax.random.uniform(keys[g], (Dx, Dh), dtype, minval=-limit, maxval=limit)
        for g in range(N_GATES)
    ]
    wx = jnp.concatenate(wx_gates, axis=1)          # (Dx, 5*Dh)
    bx = jnp.zeros((1, N_GATES * Dh), dtype)

    wh_gates = []
    for g in range(N_GATES):
        a = jax.random.normal(keys[N_GATES + g], (Dh, Dh), jnp.float32)
        q, r = jnp.linalg.qr(a)
        q = q * jnp.sign(jnp.diag(r))[None, :]
        wh_gates.append(q.astype(dtype))
    wh = jnp.concatenate(wh_gates, axis=1)          # (Dh, 5*Dh)

    bh = jnp.zeros((N_GATES, Dh), dtype).at[1].set(1.0)  # forget-gate bias = 1
    bh = bh.reshape(1, N_GATES * Dh)

    return wx, bx, wh, bh


def _reference(xt, mt, h, c, wx, bx, wh, bh):
    Dh = h.shape[1]
    g = xt @ wx + bx + h @ wh + bh
    gi, gf, gg, go, gr = [g[:, i * Dh:(i + 1) * Dh] for i in range(5)]
    it, ft, ot, rt = map(jax.nn.sigmoid, (gi, gf, go, gr))
    gt = jnp.tanh(gg)
    ct = ft * c + it * gt + rt * jnp.tanh(mt)
    ht = ot * jnp.tanh(ct)
    return ht, ct


if __name__ == "__main__":
    B, Dx, Dh = 8, 32, 32

    key = jax.random.PRNGKey(0)
    k_x, k_m, k_h, k_c, k_p = jax.random.split(key, 5)

    xt = jax.random.normal(k_x, (B, Dx), jnp.float32)
    mt = jax.random.normal(k_m, (B, Dh), jnp.float32)
    h0 = jax.random.normal(k_h, (B, Dh), jnp.float32)
    c0 = jax.random.normal(k_c, (B, Dh), jnp.float32)

    wx, bx, wh, bh = init_params(k_p, Dx, Dh)
    w_fused, b_fused = prepare_params(wx, bx, wh, bh)

    ht, (ht2, ct) = ep_lstm_cell(xt, mt, h0, c0, w_fused, b_fused)
    jax.block_until_ready((ht, ct))

    ht_ref, ct_ref = _reference(xt, mt, h0, c0, wx, bx, wh, bh)
    # bf16 matmul inputs loosen the tolerance vs. the all-f32 reference.
    assert jnp.allclose(ht, ht_ref, atol=3e-2), "ht mismatch"
    assert jnp.allclose(ct, ct_ref, atol=3e-2), "ct mismatch"

    print("KERNEL_OK")
</pallas_src>

<mosaic_0001>
module attributes {stable_mosaic.version = 11 : i64} {
  func.func @_ep_lstm_kernel(%arg0: i32, %arg1: memref<8x64xbf16, #tpu.memory_space<vmem>>, %arg2: memref<8x128xf32, #tpu.memory_space<vmem>>, %arg3: memref<8x128xf32, #tpu.memory_space<vmem>>, %arg4: memref<64x640xbf16, #tpu.memory_space<vmem>>, %arg5: memref<1x640xf32, #tpu.memory_space<vmem>>, %arg6: memref<8x128xf32, #tpu.memory_space<vmem>>, %arg7: memref<8x128xf32, #tpu.memory_space<vmem>>) attributes {dimension_semantics = [#tpu.dimension_semantics<parallel>], iteration_bounds = array<i64: 1>, scalar_prefetch = 0 : i64, scratch_operands = 0 : i64, tpu.core_type = #tpu.core_type<tc>, window_params = [{transform_indices = @transform_0, window_bounds = array<i64: 8, 64>}, {transform_indices = @transform_1, window_bounds = array<i64: 8, 128>}, {transform_indices = @transform_2, window_bounds = array<i64: 8, 128>}, {pipeline_mode = #tpu.pipeline_mode<synchronous>, transform_indices = @transform_3, window_bounds = array<i64: 64, 640>}, {pipeline_mode = #tpu.pipeline_mode<synchronous>, transform_indices = @transform_4, window_bounds = array<i64: 1, 640>}, {transform_indices = @transform_5, window_bounds = array<i64: 8, 128>}, {transform_indices = @transform_6, window_bounds = array<i64: 8, 128>}]} {
    %c0 = arith.constant 0 : index
    %c0_0 = arith.constant 0 : index
    %0 = vector.load %arg1[%c0, %c0_0] : memref<8x64xbf16, #tpu.memory_space<vmem>>, vector<8x64xbf16>
    %c0_1 = arith.constant 0 : index
    %c0_2 = arith.constant 0 : index
    %1 = vector.load %arg4[%c0_1, %c0_2] : memref<64x640xbf16, #tpu.memory_space<vmem>>, vector<64x640xbf16>
    %cst = arith.constant dense<0.000000e+00> : vector<8x640xf32>
    %2 = tpu.matmul %0, %1, %cst {dimension_numbers = #tpu.dot_dimension_numbers<[1], [0], [0], [1], [0, 0, 1, 1], [], []>} : vector<8x64xbf16>, vector<64x640xbf16>, vector<8x640xf32> -> vector<8x640xf32>
    %c0_3 = arith.constant 0 : index
    %c0_4 = arith.constant 0 : index
    %3 = vector.load %arg5[%c0_3, %c0_4] : memref<1x640xf32, #tpu.memory_space<vmem>>, vector<1x640xf32>
    %4 = vector.broadcast %3 : vector<1x640xf32> to vector<8x640xf32>
    %5 = arith.addf %2, %4 : vector<8x640xf32>
    %6 = math.tanh %5 : vector<8x640xf32>
    %7 = vector.extract_strided_slice %6 {offsets = [0, 0], sizes = [8, 128], strides = [1, 1]} : vector<8x640xf32> to vector<8x128xf32>
    %cst_5 = arith.constant 5.000000e-01 : f32
    %8 = vector.broadcast %cst_5 : f32 to vector<8x128xf32>
    %9 = arith.mulf %8, %7 : vector<8x128xf32>
    %cst_6 = arith.constant 5.000000e-01 : f32
    %10 = vector.broadcast %cst_6 : f32 to vector<8x128xf32>
    %11 = arith.addf %9, %10 : vector<8x128xf32>
    %12 = vector.extract_strided_slice %6 {offsets = [0, 128], sizes = [8, 128], strides = [1, 1]} : vector<8x640xf32> to vector<8x128xf32>
    %cst_7 = arith.constant 5.000000e-01 : f32
    %13 = vector.broadcast %cst_7 : f32 to vector<8x128xf32>
    %14 = arith.mulf %13, %12 : vector<8x128xf32>
    %cst_8 = arith.constant 5.000000e-01 : f32
    %15 = vector.broadcast %cst_8 : f32 to vector<8x128xf32>
    %16 = arith.addf %14, %15 : vector<8x128xf32>
    %17 = vector.extract_strided_slice %6 {offsets = [0, 256], sizes = [8, 128], strides = [1, 1]} : vector<8x640xf32> to vector<8x128xf32>
    %18 = vector.extract_strided_slice %6 {offsets = [0, 384], sizes = [8, 128], strides = [1, 1]} : vector<8x640xf32> to vector<8x128xf32>
    %cst_9 = arith.constant 5.000000e-01 : f32
    %19 = vector.broadcast %cst_9 : f32 to vector<8x128xf32>
    %20 = arith.mulf %19, %18 : vector<8x128xf32>
    %cst_10 = arith.constant 5.000000e-01 : f32
    %21 = vector.broadcast %cst_10 : f32 to vector<8x128xf32>
    %22 = arith.addf %20, %21 : vector<8x128xf32>
    %23 = vector.extract_strided_slice %6 {offsets = [0, 512], sizes = [8, 128], strides = [1, 1]} : vector<8x640xf32> to vector<8x128xf32>
    %cst_11 = arith.constant 5.000000e-01 : f32
    %24 = vector.broadcast %cst_11 : f32 to vector<8x128xf32>
    %25 = arith.mulf %24, %23 : vector<8x128xf32>
    %cst_12 = arith.constant 5.000000e-01 : f32
    %26 = vector.broadcast %cst_12 : f32 to vector<8x128xf32>
    %27 = arith.addf %25, %26 : vector<8x128xf32>
    %c0_13 = arith.constant 0 : index
    %c0_14 = arith.constant 0 : index
    %28 = vector.load %arg2[%c0_13, %c0_14] : memref<8x128xf32, #tpu.memory_space<vmem>>, vector<8x128xf32>
    %29 = arith.mulf %16, %28 : vector<8x128xf32>
    %30 = arith.mulf %11, %17 : vector<8x128xf32>
    %31 = arith.addf %29, %30 : vector<8x128xf32>
    %c0_15 = arith.constant 0 : index
    %c0_16 = arith.constant 0 : index
    %32 = vector.load %arg3[%c0_15, %c0_16] : memref<8x128xf32, #tpu.memory_space<vmem>>, vector<8x128xf32>
    %33 = math.tanh %32 : vector<8x128xf32>
    %34 = arith.mulf %27, %33 : vector<8x128xf32>
    %35 = arith.addf %31, %34 : vector<8x128xf32>
    %36 = math.tanh %35 : vector<8x128xf32>
    %37 = arith.mulf %22, %36 : vector<8x128xf32>
    %c0_17 = arith.constant 0 : index
    %c0_18 = arith.constant 0 : index
    %38 = vector.load %arg6[%c0_17, %c0_18] : memref<8x128xf32, #tpu.memory_space<vmem>>, vector<8x128xf32>
    tpu.vector_store %arg6[%c0_17, %c0_18], %37 {strides = array<i32>} : memref<8x128xf32, #tpu.memory_space<vmem>>, vector<8x128xf32>,
    %c0_19 = arith.constant 0 : index
    %c0_20 = arith.constant 0 : index
    %39 = vector.load %arg7[%c0_19, %c0_20] : memref<8x128xf32, #tpu.memory_space<vmem>>, vector<8x128xf32>
    tpu.vector_store %arg7[%c0_19, %c0_20], %35 {strides = array<i32>} : memref<8x128xf32, #tpu.memory_space<vmem>>, vector<8x128xf32>,
    return
  }
  func.func @transform_0(%arg0: i32) -> (i32, i32) {
    %c0_i32 = arith.constant 0 : i32
    %c0_i32_0 = arith.constant 0 : i32
    return %arg0, %c0_i32 : i32, i32
  }
  func.func @transform_1(%arg0: i32) -> (i32, i32) {
    %c0_i32 = arith.constant 0 : i32
    %c0_i32_0 = arith.constant 0 : i32
    return %arg0, %c0_i32 : i32, i32
  }
  func.func @transform_2(%arg0: i32) -> (i32, i32) {
    %c0_i32 = arith.constant 0 : i32
    %c0_i32_0 = arith.constant 0 : i32
    return %arg0, %c0_i32 : i32, i32
  }
  func.func @transform_3(%arg0: i32) -> (i32, i32) {
    %c0_i32 = arith.constant 0 : i32
    %c0_i32_0 = arith.constant 0 : i32
    %c0_i32_1 = arith.constant 0 : i32
    return %c0_i32, %c0_i32_0 : i32, i32
  }
  func.func @transform_4(%arg0: i32) -> (i32, i32) {
    %c0_i32 = arith.constant 0 : i32
    %c0_i32_0 = arith.constant 0 : i32
    %c0_i32_1 = arith.constant 0 : i32
    return %c0_i32, %c0_i32_0 : i32, i32
  }
  func.func @transform_5(%arg0: i32) -> (i32, i32) {
    %c0_i32 = arith.constant 0 : i32
    %c0_i32_0 = arith.constant 0 : i32
    return %arg0, %c0_i32 : i32, i32
  }
  func.func @transform_6(%arg0: i32) -> (i32, i32) {
    %c0_i32 = arith.constant 0 : i32
    %c0_i32_0 = arith.constant 0 : i32
    return %arg0, %c0_i32 : i32, i32
  }
}

</mosaic_0001>

<bundles_post_ra>
// kernel: ep_lstm_cell.1
= control target key start
LH: loop header
LB: loop body
LE: loop exit
PB: predicated region body
PF: predicated region fallthrough
CT: control target
= control target key end

     0   :  { %12 = vsyncpa [#allocation3], 0  ;;  %s585_s0 = inlined_call_operand.vmem [shape: bf16[8,64], index: 0, kind: input, shape index: {}]   ;;  %s586_s1 = inlined_call_operand.vmem [shape: f32[8,128], index: 1, kind: input, shape index: {}]   ;;  %s587_s2 = inlined_call_operand.vmem [shape: f32[8,128], index: 2, kind: input, shape index: {}]   ;;  %s588_s3 = inlined_call_operand.hbm [shape: bf16[64,640], index: 3, kind: input, shape index: {}]   ;;  %s589_s4 = inlined_call_operand.vmem [shape: f32[1,640], index: 4, kind: input, shape index: {}]   ;;  %s590_s5 = inlined_call_operand.vmem [shape: f32[8,128], index: 5, kind: output, shape index: {0}]   ;;  %s591_s6 = inlined_call_operand.hbm [shape: f32[8,128], index: 6, kind: output, shape index: {1}]  }
   0x1   :  { %13 = vsyncpa [#allocation4], 0  ;;  %s501_s21 = smov [#allocation2]   ;;  %s453_s25 = scalar_lea.hbm %s588_s3, 2560 }
   0x2   :  { %s25_s22 = sshll.u32 %s501_s21, 4  ;;  %p454_p0 = scmp.ne.s32.totalorder %s588_s3, %s453_s25  ;;  %s26_s22 = int_to_ptr.vmem [resolvable:$true] %s25_s22 }
   0x3   :  { %p457_p1 = scmp.lt.u32.totalorder %s453_s25, %s588_s3 }
   0x5   :  { %p459_p2 = pnand %p457_p1, %p454_p0 }
   0x7   :  { %462 = shalt.err (!%p459_p2)
}
   0x8   :  { %s463_s30 = scalar_lea.vmem %s26_s22, 2560  ;;  %p468_p4 = scmp.lt.s32.totalorder %s26_s22, %s26_s22 }
   0x9   :  { %p464_p3 = scmp.ne.s32.totalorder %s26_s22, %s463_s30  ;;  %p469_p5 = scmp.lt.s32.totalorder %s463_s30, %s463_s30 }
   0xb   :  { %p470_p6 = por %p469_p5, %p468_p4 }
   0xd   :  { %p471_p7 = pnand %p470_p6, %p464_p3 }
   0xf   :  { %474 = shalt.err (!%p471_p7)
}
  0x10   :  { %s502_s7 = smov 320   ;;  %s503_s8 = smov 20  }
  0x11   :  { %31 = dma.hbm_to_vmem [thread:$0]  %s588_s3, 2560, %s26_s22, [#allocation3], %s502_s7, %s502_s7, %s503_s8  }
  0x12   :  { %497 = dma.done.wait [#allocation3], 2560  }
  0x13   :  { %498 = vsyncadd [#allocation3], 4294964736  ;;  %v504_v0 = vmov 0   ;;  %v411_v1 = vld [vmem:[#allocation2 + $0x4] ss:$20 sps:$4 sm:$0xff]   ;;  %vm194_vm0 = vcmask 523264   ;;  %v65_v23 = vlaneseq }
  0x14   :  { %230 = vmatprep.mubr.bf16.mxu0 %v504_v0  ;;  %271 = vmatprep.mubr.bf16.mxu1 %v504_v0  ;;  %v413_v2 = vld [vmem:[#allocation2] ss:$20 sps:$4 sm:$0xff]   ;;  %v416_v4 = vld [vmem:[#allocation2 + $0x28] ss:$20 sps:$4 sm:$0xff]   ;;  %v425_v9 = vld [vmem:[#allocation2 + $0x30] ss:$20 sps:$4 sm:$0xff]  }
  0x15   :  { %198 = vmatprep.subr.bf16.mxu0 %v411_v1  ;;  %v414_v3 = vld [vmem:[#allocation2 + $0x2c] ss:$20 sps:$4 sm:$0xff]   ;;  %v419_v6 = vld [vmem:[#allocation2 + $0x8] ss:$20 sps:$4 sm:$0xff]   ;;  %v422_v10 = vld [vmem:[#allocation2 + $0x50] ss:$20 sps:$4 sm:$0xff]  }
  0x16   :  { %199 = vmatpush1.bf16.msra.mxu0 %v413_v2  ;;  %v417_v5 = vld [vmem:[#allocation2 + $0xc] ss:$20 sps:$4 sm:$0xff]   ;;  %v420_v7 = vld [vmem:[#allocation2 + $0x54] ss:$20 sps:$4 sm:$0xff]   ;;  %v426_v11 = vld [vmem:[#allocation2 + $0x7c] ss:$20 sps:$4 sm:$0xff]  }
  0x17   :  { %200 = vmatprep.subr.bf16.mxu0 %v414_v3  ;;  %239 = vmatprep.subr.bf16.mxu1 %v417_v5  ;;  %v423_v8 = vld [vmem:[#allocation2 + $0x34] ss:$20 sps:$4 sm:$0xff]   ;;  %v429_v12 = vld [vmem:[#allocation2 + $0x5c] ss:$20 sps:$4 sm:$0xff]   ;;  %v431_v13 = vld [vmem:[#allocation2 + $0x58] ss:$20 sps:$4 sm:$0xff]  }
  0x18   :  { %240 = vmatpush1.bf16.msra.mxu1 %v419_v6  ;;  %v428_v14 = vld [vmem:[#allocation2 + $0x78] ss:$20 sps:$4 sm:$0xff]   ;;  %v435_v16 = vld [vmem:[#allocation2 + $0x80] ss:$20 sps:$4 sm:$0xff]   ;;  %v434_v18 = vld [vmem:[#allocation2 + $0x10] ss:$20 sps:$4 sm:$0xff]  }
  0x19   :  { %241 = vmatprep.subr.bf16.mxu1 %v423_v8  ;;  %v432_v15 = vld [vmem:[#allocation2 + $0x84] ss:$20 sps:$4 sm:$0xff]   ;;  %v38_v17 = vld [vmem:[%s585_s0] sm:$0xf]  ;;  %v505_v19 = vmov 0.0   ;;  %vm506_vm1 = vmmov 0  }
  0x1a   :  { %201 = vmatpush1.bf16.msra.mxu0 %v416_v4  ;;  %v436_v20 = vld [vmem:[#allocation2 + $0x38] ss:$20 sps:$4 sm:$0xff]   ;;  %v437_v21 = vld [vmem:[#allocation2 + $0x60] ss:$20 sps:$4 sm:$0xff]   ;;  %v438_v22 = vld [vmem:[#allocation2 + $0x88] ss:$20 sps:$4 sm:$0xff]  }
  0x1b   :  { %202 = vmatprep.subr.bf16.mxu0 %v420_v7  ;;  %v66_v24 = vshrl.u32 %v65_v23, 7  ;;  %v63_v26 = vld [vmem:[%s589_s4] sm:$0x1f] }
  0x1c   :  { %242 = vmatpush1.bf16.msra.mxu1 %v425_v9  ;;  %v333_v51 = vld [vmem:[%s586_s1] sm:$0xff]  ;;  %s507_s1 = smov [#allocation5]  }
  0x1d   :  { %243 = vmatprep.subr.bf16.mxu1 %v429_v12  ;;  %v67_v25 = vsub.s32 0, %v66_v24  ;;  %v71_v27 = vsub.s32 1, %v66_v24  ;;  %v75_v28 = vsub.s32 2, %v66_v24  ;;  %v83_v43 = vsub.s32 4, %v66_v24  ;;  %v337_v59 = vld [vmem:[%s587_s2] sm:$0xff]  ;;  %s353_s16 = sshll.u32 %s507_s1, 4  ;;  %s354_s16 = int_to_ptr.vmem [resolvable:$true] %s353_s16 }
  0x1e   :  { %203 = vmatpush1.bf16.msra.mxu0 %v422_v10  ;;  %v79_v56 = vsub.s32 3, %v66_v24  ;;  %s475_s2 = scalar_lea.vmem %s354_s16, 128  ;;  %p480_p9 = scmp.lt.s32.totalorder %s354_s16, %s354_s16 }
  0x1f   :  { %204 = vmatprep.subr.bf16.mxu0 %v426_v11  ;;  %v68_v29 = vrot.slane %v63_v26, %v67_v25  ;;  %v72_v30 = vrot.slane %v63_v26, %v71_v27  ;;  %v76_v32 = vrot.slane %v63_v26, %v75_v28  ;;  %v84_v45 = vrot.slane %v63_v26, %v83_v43  ;;  %p476_p8 = scmp.ne.s32.totalorder %s354_s16, %s475_s2  ;;  %p481_p10 = scmp.lt.s32.totalorder %s475_s2, %s475_s2 }
  0x20   :  { %244 = vmatpush1.bf16.msra.mxu1 %v431_v13  ;;  %v80_v63 = vrot.slane %v63_v26, %v79_v56 }
  0x21   :  { %245 = vmatprep.subr.bf16.mxu1 %v432_v15  ;;  %p482_p11 = por %p481_p10, %p480_p9 }
  0x22   :  { %205 = vmatpush1.bf16.msra.mxu0 %v428_v14 }
  0x23   :  { %392 = vmatprep.subr.bf16.mxu0 %v505_v19  ;;  %p483_p12 = pnand %p482_p11, %p476_p8 }
  0x24   :  { %246 = vmatpush1.bf16.msra.mxu1 %v435_v16 }
  0x25   :  { %384 = vmatmul.mubr.msk.bf16.vlgmr.msra.gmra.mrb[0].mxu0 %vm194_vm0, %v38_v17 }
  0x26   :  { %393 = vmatpush3.bf16.msra.mxu0 %v434_v18  ;;  %400 = vmatprep.mubr.msk.bf16.mxu0 %vm506_vm1, %v505_v19 }
  0x27   :  { %394 = vmatprep.subr.bf16.mxu0 %v505_v19  ;;  %385 = vmatmul.mubr.msk.bf16.vlgmr.msra.gmra.mrb[0].mxu1 %vm194_vm0, %v38_v17 }
  0x2a   :  { %395 = vmatpush3.bf16.msra.mxu0 %v436_v20 }
  0x2b   :  { %396 = vmatprep.subr.bf16.mxu0 %v505_v19 }
  0x2e   :  { %397 = vmatpush3.bf16.msra.mxu0 %v437_v21 }
  0x2f   :  { %398 = vmatprep.subr.bf16.mxu0 %v505_v19 }
  0x32   :  { %399 = vmatpush3.bf16.msra.mxu0 %v438_v22 }
  0x35   :  { %401 = vmatmul.mubr.msk.bf16.vlgmr.msra.gmra.mrb[4].mxu0 %vm194_vm0, %v38_v17 }
  0xf8   :  { %v232_v31 = vpop.f32.mrb[0].mxu0 }
  0xf9   :  { %v233_v33 = vadd.f32 %v232_v31, %v68_v29  ;;  %v234_v34 = vpop.f32.mrb[1].mxu0 }
  0xfa   :  { %v235_v35 = vadd.f32 %v234_v34, %v72_v30  ;;  %v236_v36 = vpop.f32.mrb[2].mxu0  ;;  %v273_v38 = vpop.f32.mrb[0].mxu1 }
  0xfb   :  { %439 = vtanh.f32 %v233_v33  ;;  %v237_v37 = vpop.f32.mrb[3].mxu0  ;;  %v274_v39 = vadd.f32 %v273_v38, %v76_v32  ;;  %v275_v40 = vpop.f32.mrb[1].mxu1 }
  0xfc   :  { %441 = vtanh.f32 %v235_v35  ;;  %v277_v41 = vpop.f32.mrb[2].mxu1  ;;  %v276_v0 = vadd.f32 %v275_v40, %v80_v63 }
  0xfd   :  { %443 = vtanh.f32 %v274_v39  ;;  %v278_v42 = vpop.f32.mrb[3].mxu1 }
 0x105   :  { %v440_v44 = vpop.eup %439 }
 0x106   :  { %v442_v46 = vpop.eup %441  ;;  %v325_v47 = vmul.f32 0.5, %v440_v44 }
 0x107   :  { %v327_v48 = vmul.f32 0.5, %v442_v46  ;;  %v444_v49 = vpop.eup %443 }
 0x108   :  { %v326_v50 = vadd.f32 0.5, %v325_v47  ;;  %v314_v52 = vpop.f32.mrb[4].mxu0 }
 0x109   :  { %v328_v53 = vadd.f32 0.5, %v327_v48  ;;  %v315_v54 = vadd.f32 %v314_v52, %v84_v45  ;;  %v402_v55 = vpop.f32.mrb[5].mxu0 }
 0x10a   :  { %v317_v57 = vpop.f32.mrb[6].mxu0  ;;  %v335_v58 = vmul.f32 %v444_v49, %v326_v50 }
 0x10b   :  { %v334_v60 = vmul.f32 %v333_v51, %v328_v53  ;;  %445 = vtanh.f32 %v315_v54  ;;  %v403_v61 = vpop.f32.mrb[7].mxu0 }
 0x10c   :  { %447 = vtanh.f32 %v337_v59 }
 0x10d   :  { %v336_v62 = vadd.f32 %v335_v58, %v334_v60  ;;  %449 = vtanh.f32 %v276_v0 }
 0x115   :  { %v446_v1 = vpop.eup %445 }
 0x116   :  { %v331_v2 = vmul.f32 0.5, %v446_v1  ;;  %v448_v3 = vpop.eup %447 }
 0x118   :  { %v332_v4 = vadd.f32 0.5, %v331_v2 }
 0x11a   :  { %v339_v5 = vmul.f32 %v448_v3, %v332_v4 }
 0x11c   :  { %v340_v6 = vadd.f32 %v339_v5, %v336_v62 }
 0x11e   :  { %451 = vtanh.f32 %v340_v6  ;;  %344 = vst [vmem:[#allocation5] sm:$0xff] %v340_v6 }
 0x11f   :  { %486 = shalt.err (!%p483_p12)
}
 0x120   :  { %s487_s19 = scalar_lea.hbm %s591_s6, 128 }
 0x121   :  { %p488_p13 = scmp.ne.s32.totalorder %s591_s6, %s487_s19  ;;  %p491_p0 = scmp.lt.u32.totalorder %s487_s19, %s591_s6 }
 0x123   :  { %p493_p1 = pnand %p491_p0, %p488_p13 }
 0x125   :  { %496 = shalt.err (!%p493_p1)
}
 0x126   :  { %356 = dma.vmem_to_hbm [thread:$0]  %s354_s16, 128, %s591_s6, [#allocation4]   ;;  %v450_v7 = vpop.eup %449 }
 0x127   :  { %v329_v8 = vmul.f32 0.5, %v450_v7 }
 0x128   :  { %v452_v10 = vpop.eup %451 }
 0x129   :  { %v330_v9 = vadd.f32 0.5, %v329_v8 }
 0x12b   :  { %v342_v11 = vmul.f32 %v452_v10, %v330_v9 }
 0x12d   :  { %343 = vst [vmem:[%s590_s5] sm:$0xff] %v342_v11 }
 0x12e   :  { %499 = dma.done.wait [#allocation4], 128  }
 0x12f   :  { %500 = vsyncadd [#allocation4], 4294967168 }
 0x130   :  { %362 = vsyncpa [#allocation3], 1 }
 0x131   :  { %363 = vsyncpa [#allocation4], 1 }

</bundles_post_ra>
